<compile_context>
chip_gen: v7x
topology: tpu7x:2x2x1
jax: 0.10.0
libtpu: 0.0.40
codegen_flags: <defaults>
</compile_context>

<pallas_src>
import functools

import jax
import jax.numpy as jnp
from jax.experimental import pallas as pl
from jax.experimental.pallas import tpu as pltpu


def _round_up(v: int, m: int) -> int:
    return ((v + m - 1) // m) * m


def _cdiv(a: int, b: int) -> int:
    return (a + b - 1) // b


def actor_kernel(x_ref, g_ref, w1_ref, b1_ref, w2_ref, b2_ref, w3_ref, b3_ref,
                 out_ref, *, out_dim: int):
    # MLP: Linear + ReLU, Linear + ReLU, Linear. bf16 MXU operands, f32 accumulation.
    x = x_ref[...]
    h1 = jnp.dot(x, w1_ref[...], preferred_element_type=jnp.float32) + b1_ref[...]
    h1 = jnp.maximum(h1, 0.0).astype(w2_ref.dtype)
    h2 = jnp.dot(h1, w2_ref[...], preferred_element_type=jnp.float32) + b2_ref[...]
    h2 = jnp.maximum(h2, 0.0).astype(w3_ref.dtype)
    logits = jnp.dot(h2, w3_ref[...], preferred_element_type=jnp.float32) + b3_ref[...]

    # hard=True forward value: one_hot(argmax(logits + g)).
    # softmax((z+g)/tau) is monotone in (z+g) for tau>0 -> argmax unchanged.
    y = logits + g_ref[...].astype(jnp.float32)
    lane = jax.lax.broadcasted_iota(jnp.int32, y.shape, dimension=1)
    y = jnp.where(lane < out_dim, y, -jnp.inf)          # mask padded lanes

    m = jnp.max(y, axis=-1, keepdims=True)
    hit = jnp.where(y == m, lane, jnp.iinfo(jnp.int32).max)
    amin = jnp.min(hit, axis=-1, keepdims=True)          # first-index tie-break
    out_ref[...] = jnp.where(lane == amin, 1.0, 0.0).astype(out_ref.dtype)
    # TODO(synk): straight-through (soft-softmax) gradient path is backward-only;
    # forward semantics are fully covered above.


def actor_forward(x, params, out_dim, noise_key, *, block_b=1024, min_tiles=2,
                  out_dtype=jnp.float32, return_padded=False):
    """x: (B, input_dim) float.  params: w1,b1,w2,b2,w3,b3 (weights bf16 (in,out),
    hidden/output lane-padded to 128).  Returns (B, out_dim) hard one-hot
    (or the (B, 128) bf16 lane-padded slab if return_padded=True)."""
    B, in_dim = x.shape
    h1 = params["w1"].shape[1]
    h2 = params["w2"].shape[1]
    lanes = params["w3"].shape[1]

    # Balanced batch tiles: big enough to amortize per-step overhead, >=2 tiles
    # when the batch allows (v7x megacore), minimal row padding.
    n_tiles = _cdiv(B, block_b)
    n_tiles = max(n_tiles, min(min_tiles, _cdiv(B, 8)))
    tb = _round_up(_cdiv(B, n_tiles), 8)
    n_tiles = _cdiv(B, tb)
    padded_b = tb * n_tiles

    x = x.astype(params["w1"].dtype)
    if padded_b != B:
        x = jnp.pad(x, ((0, padded_b - B), (0, 0)))

    # Standard Gumbel noise, streamed in as bf16 (half the f32 stream).
    g = jax.random.gumbel(noise_key, (padded_b, lanes), jnp.float32).astype(jnp.bfloat16)

    kernel = functools.partial(actor_kernel, out_dim=out_dim)

    def resident(shape):  # same block every grid step -> stays in VMEM
        return pl.BlockSpec(shape, lambda i: (0, 0))

    bytes_weights = sum(int(v.size) * v.dtype.itemsize for v in params.values())
    cost = pl.CostEstimate(
        flops=2 * padded_b * (in_dim * h1 + h1 * h2 + h2 * lanes),
        transcendentals=0,
        bytes_accessed=(padded_b * in_dim * x.dtype.itemsize   # x
                        + padded_b * lanes * 2                 # noise (bf16)
                        + padded_b * lanes * 2                 # out (bf16)
                        + bytes_weights),
    )

    out = pl.pallas_call(
        kernel,
        out_shape=jax.ShapeDtypeStruct((padded_b, lanes), jnp.bfloat16),
        grid=(n_tiles,),
        in_specs=[
            pl.BlockSpec((tb, in_dim), lambda i: (i, 0)),       # x tile
            pl.BlockSpec((tb, lanes), lambda i: (i, 0)),        # gumbel noise tile
            resident((in_dim, h1)), resident((1, h1)),           # W1, b1
            resident((h1, h2)), resident((1, h2)),               # W2, b2
            resident((h2, lanes)), resident((1, lanes)),         # W3, b3 (lane-padded)
        ],
        out_specs=pl.BlockSpec((tb, lanes), lambda i: (i, 0)),
        compiler_params=pltpu.CompilerParams(dimension_semantics=("parallel",)),
        cost_estimate=cost,
    )(x, g, params["w1"], params["b1"], params["w2"], params["b2"],
      params["w3"], params["b3"])

    if return_padded:
        # Lane-padded columns are exactly 0; row padding (if any) is dropped.
        return out[:B]
    return out[:B, :out_dim].astype(out_dtype)


def init_actor_params(key, input_dim, output_dim, hidden=(64, 64), *,
                      lane_multiple=128, weight_dtype=jnp.bfloat16):
    """Mirror of the module init: orthogonal weights (on the real dims),
    nn.Linear-default uniform biases.  Weights stored transposed as (in, out)
    in bf16; hidden and output dims zero-padded to 128 lanes (inert pads)."""
    dims = [input_dim] + list(hidden) + [output_dim]
    pads = [input_dim] + [_round_up(h, lane_multiple) for h in hidden] \
           + [_round_up(output_dim, lane_multiple)]
    ortho = jax.nn.initializers.orthogonal()
    params = {}
    for i in range(3):
        key, kw, kb = jax.random.split(key, 3)
        fan_in, fan_out = dims[i], dims[i + 1]
        # nn.Linear stores (out, in); orthogonal-init there, transpose to (in, out).
        w = ortho(kw, (fan_out, fan_in), jnp.float32).T
        bound = 1.0 / float(fan_in) ** 0.5
        b = jax.random.uniform(kb, (1, fan_out), jnp.float32, -bound, bound)
        pin, pout = pads[i], pads[i + 1]
        if (pin, pout) != (fan_in, fan_out):
            w = jnp.pad(w, ((0, pin - fan_in), (0, pout - fan_out)))
            b = jnp.pad(b, ((0, 0), (0, pout - fan_out)))
        params[f"w{i+1}"] = w.astype(weight_dtype)
        params[f"b{i+1}"] = b                        # biases stay f32
    return params


if __name__ == "__main__":
    B, INPUT_DIM, OUTPUT_DIM = 8, 32, 16

    key = jax.random.PRNGKey(0)
    k_params, k_x, k_noise = jax.random.split(key, 3)

    params = init_actor_params(k_params, INPUT_DIM, OUTPUT_DIM)
    x = jax.random.normal(k_x, (B, INPUT_DIM), jnp.float32)

    out = actor_forward(x, params, OUTPUT_DIM, k_noise)
    out = jax.block_until_ready(out)

    assert out.shape == (B, OUTPUT_DIM)
    # hard gumbel-softmax output must be exactly one-hot per row
    assert bool(jnp.all(jnp.sum(out, axis=-1) == 1.0))
    assert bool(jnp.all((out == 0.0) | (out == 1.0)))
    print("KERNEL_OK")
</pallas_src>

<mosaic_0001>
module attributes {stable_mosaic.version = 11 : i64} {
  func.func @actor_kernel(%arg0: i32, %arg1: memref<8x32xbf16, #tpu.memory_space<vmem>>, %arg2: memref<8x128xbf16, #tpu.memory_space<vmem>>, %arg3: memref<32x128xbf16, #tpu.memory_space<vmem>>, %arg4: memref<1x128xf32, #tpu.memory_space<vmem>>, %arg5: memref<128x128xbf16, #tpu.memory_space<vmem>>, %arg6: memref<1x128xf32, #tpu.memory_space<vmem>>, %arg7: memref<128x128xbf16, #tpu.memory_space<vmem>>, %arg8: memref<1x128xf32, #tpu.memory_space<vmem>>, %arg9: memref<8x128xbf16, #tpu.memory_space<vmem>>) attributes {dimension_semantics = [#tpu.dimension_semantics<parallel>], iteration_bounds = array<i64: 1>, scalar_prefetch = 0 : i64, scratch_operands = 0 : i64, tpu.core_type = #tpu.core_type<tc>, window_params = [{transform_indices = @transform_0, window_bounds = array<i64: 8, 32>}, {transform_indices = @transform_1, window_bounds = array<i64: 8, 128>}, {pipeline_mode = #tpu.pipeline_mode<synchronous>, transform_indices = @transform_2, window_bounds = array<i64: 32, 128>}, {pipeline_mode = #tpu.pipeline_mode<synchronous>, transform_indices = @transform_3, window_bounds = array<i64: 1, 128>}, {pipeline_mode = #tpu.pipeline_mode<synchronous>, transform_indices = @transform_4, window_bounds = array<i64: 128, 128>}, {pipeline_mode = #tpu.pipeline_mode<synchronous>, transform_indices = @transform_5, window_bounds = array<i64: 1, 128>}, {pipeline_mode = #tpu.pipeline_mode<synchronous>, transform_indices = @transform_6, window_bounds = array<i64: 128, 128>}, {pipeline_mode = #tpu.pipeline_mode<synchronous>, transform_indices = @transform_7, window_bounds = array<i64: 1, 128>}, {transform_indices = @transform_8, window_bounds = array<i64: 8, 128>}]} {
    %c0 = arith.constant 0 : index
    %c0_0 = arith.constant 0 : index
    %0 = vector.load %arg1[%c0, %c0_0] : memref<8x32xbf16, #tpu.memory_space<vmem>>, vector<8x32xbf16>
    %c0_1 = arith.constant 0 : index
    %c0_2 = arith.constant 0 : index
    %1 = vector.load %arg3[%c0_1, %c0_2] : memref<32x128xbf16, #tpu.memory_space<vmem>>, vector<32x128xbf16>
    %cst = arith.constant dense<0.000000e+00> : vector<8x128xf32>
    %2 = tpu.matmul %0, %1, %cst {dimension_numbers = #tpu.dot_dimension_numbers<[1], [0], [0], [1], [0, 0, 1, 1], [], []>} : vector<8x32xbf16>, vector<32x128xbf16>, vector<8x128xf32> -> vector<8x128xf32>
    %c0_3 = arith.constant 0 : index
    %c0_4 = arith.constant 0 : index
    %3 = vector.load %arg4[%c0_3, %c0_4] : memref<1x128xf32, #tpu.memory_space<vmem>>, vector<1x128xf32>
    %4 = vector.broadcast %3 : vector<1x128xf32> to vector<8x128xf32>
    %5 = arith.addf %2, %4 : vector<8x128xf32>
    %cst_5 = arith.constant 0.000000e+00 : f32
    %6 = vector.broadcast %cst_5 : f32 to vector<8x128xf32>
    %7 = arith.maximumf %5, %6 : vector<8x128xf32>
    %8 = arith.truncf %7 : vector<8x128xf32> to vector<8x128xbf16>
    %c0_6 = arith.constant 0 : index
    %c0_7 = arith.constant 0 : index
    %9 = vector.load %arg5[%c0_6, %c0_7] : memref<128x128xbf16, #tpu.memory_space<vmem>>, vector<128x128xbf16>
    %cst_8 = arith.constant dense<0.000000e+00> : vector<8x128xf32>
    %10 = tpu.matmul %8, %9, %cst_8 {dimension_numbers = #tpu.dot_dimension_numbers<[1], [0], [0], [1], [0, 0, 1, 1], [], []>} : vector<8x128xbf16>, vector<128x128xbf16>, vector<8x128xf32> -> vector<8x128xf32>
    %c0_9 = arith.constant 0 : index
    %c0_10 = arith.constant 0 : index
    %11 = vector.load %arg6[%c0_9, %c0_10] : memref<1x128xf32, #tpu.memory_space<vmem>>, vector<1x128xf32>
    %12 = vector.broadcast %11 : vector<1x128xf32> to vector<8x128xf32>
    %13 = arith.addf %10, %12 : vector<8x128xf32>
    %cst_11 = arith.constant 0.000000e+00 : f32
    %14 = vector.broadcast %cst_11 : f32 to vector<8x128xf32>
    %15 = arith.maximumf %13, %14 : vector<8x128xf32>
    %16 = arith.truncf %15 : vector<8x128xf32> to vector<8x128xbf16>
    %c0_12 = arith.constant 0 : index
    %c0_13 = arith.constant 0 : index
    %17 = vector.load %arg7[%c0_12, %c0_13] : memref<128x128xbf16, #tpu.memory_space<vmem>>, vector<128x128xbf16>
    %cst_14 = arith.constant dense<0.000000e+00> : vector<8x128xf32>
    %18 = tpu.matmul %16, %17, %cst_14 {dimension_numbers = #tpu.dot_dimension_numbers<[1], [0], [0], [1], [0, 0, 1, 1], [], []>} : vector<8x128xbf16>, vector<128x128xbf16>, vector<8x128xf32> -> vector<8x128xf32>
    %c0_15 = arith.constant 0 : index
    %c0_16 = arith.constant 0 : index
    %19 = vector.load %arg8[%c0_15, %c0_16] : memref<1x128xf32, #tpu.memory_space<vmem>>, vector<1x128xf32>
    %20 = vector.broadcast %19 : vector<1x128xf32> to vector<8x128xf32>
    %21 = arith.addf %18, %20 : vector<8x128xf32>
    %c0_17 = arith.constant 0 : index
    %c0_18 = arith.constant 0 : index
    %22 = vector.load %arg2[%c0_17, %c0_18] : memref<8x128xbf16, #tpu.memory_space<vmem>>, vector<8x128xbf16>
    %23 = arith.extf %22 : vector<8x128xbf16> to vector<8x128xf32>
    %24 = arith.addf %21, %23 : vector<8x128xf32>
    %25 = tpu.iota {dimensions = array<i32: 1>} : vector<8x128xi32>
    %c16_i32 = arith.constant 16 : i32
    %26 = vector.broadcast %c16_i32 : i32 to vector<8x128xi32>
    %27 = arith.cmpi slt, %25, %26 : vector<8x128xi32>
    %cst_19 = arith.constant 0xFF800000 : f32
    %28 = vector.broadcast %cst_19 : f32 to vector<8x128xf32>
    %29 = arith.select %27, %24, %28 : vector<8x128xi1>, vector<8x128xf32>
    %cst_20 = arith.constant dense<0xFF800000> : vector<8xf32>
    %30 = vector.multi_reduction <maximumf>, %29, %cst_20 [1] : vector<8x128xf32> to vector<8xf32>
    %31 = vector.shape_cast %30 : vector<8xf32> to vector<8x1xf32>
    %32 = vector.broadcast %31 : vector<8x1xf32> to vector<8x128xf32>
    %33 = arith.cmpf oeq, %29, %32 : vector<8x128xf32>
    %c2147483647_i32 = arith.constant 2147483647 : i32
    %34 = vector.broadcast %c2147483647_i32 : i32 to vector<8x128xi32>
    %35 = arith.select %33, %25, %34 : vector<8x128xi1>, vector<8x128xi32>
    %cst_21 = arith.constant dense<2147483647> : vector<8xi32>
    %36 = vector.multi_reduction <minsi>, %35, %cst_21 [1] : vector<8x128xi32> to vector<8xi32>
    %37 = vector.shape_cast %36 : vector<8xi32> to vector<8x1xi32>
    %38 = vector.broadcast %37 : vector<8x1xi32> to vector<8x128xi32>
    %39 = arith.cmpi eq, %25, %38 : vector<8x128xi32>
    %cst_22 = arith.constant 1.000000e+00 : f32
    %cst_23 = arith.constant 0.000000e+00 : f32
    %40 = vector.broadcast %cst_22 : f32 to vector<8x128xf32>
    %41 = vector.broadcast %cst_23 : f32 to vector<8x128xf32>
    %42 = arith.select %39, %40, %41 : vector<8x128xi1>, vector<8x128xf32>
    %43 = arith.truncf %42 : vector<8x128xf32> to vector<8x128xbf16>
    %c0_24 = arith.constant 0 : index
    %c0_25 = arith.constant 0 : index
    %44 = vector.load %arg9[%c0_24, %c0_25] : memref<8x128xbf16, #tpu.memory_space<vmem>>, vector<8x128xbf16>
    tpu.vector_store %arg9[%c0_24, %c0_25], %43 {strides = array<i32>} : memref<8x128xbf16, #tpu.memory_space<vmem>>, vector<8x128xbf16>,
    return
  }
  func.func @transform_0(%arg0: i32) -> (i32, i32) {
    %c0_i32 = arith.constant 0 : i32
    %c0_i32_0 = arith.constant 0 : i32
    return %arg0, %c0_i32 : i32, i32
  }
  func.func @transform_1(%arg0: i32) -> (i32, i32) {
    %c0_i32 = arith.constant 0 : i32
    %c0_i32_0 = arith.constant 0 : i32
    return %arg0, %c0_i32 : i32, i32
  }
  func.func @transform_2(%arg0: i32) -> (i32, i32) {
    %c0_i32 = arith.constant 0 : i32
    %c0_i32_0 = arith.constant 0 : i32
    %c0_i32_1 = arith.constant 0 : i32
    return %c0_i32, %c0_i32_0 : i32, i32
  }
  func.func @transform_3(%arg0: i32) -> (i32, i32) {
    %c0_i32 = arith.constant 0 : i32
    %c0_i32_0 = arith.constant 0 : i32
    %c0_i32_1 = arith.constant 0 : i32
    return %c0_i32, %c0_i32_0 : i32, i32
  }
  func.func @transform_4(%arg0: i32) -> (i32, i32) {
    %c0_i32 = arith.constant 0 : i32
    %c0_i32_0 = arith.constant 0 : i32
    %c0_i32_1 = arith.constant 0 : i32
    return %c0_i32, %c0_i32_0 : i32, i32
  }
  func.func @transform_5(%arg0: i32) -> (i32, i32) {
    %c0_i32 = arith.constant 0 : i32
    %c0_i32_0 = arith.constant 0 : i32
    %c0_i32_1 = arith.constant 0 : i32
    return %c0_i32, %c0_i32_0 : i32, i32
  }
  func.func @transform_6(%arg0: i32) -> (i32, i32) {
    %c0_i32 = arith.constant 0 : i32
    %c0_i32_0 = arith.constant 0 : i32
    %c0_i32_1 = arith.constant 0 : i32
    return %c0_i32, %c0_i32_0 : i32, i32
  }
  func.func @transform_7(%arg0: i32) -> (i32, i32) {
    %c0_i32 = arith.constant 0 : i32
    %c0_i32_0 = arith.constant 0 : i32
    %c0_i32_1 = arith.constant 0 : i32
    return %c0_i32, %c0_i32_0 : i32, i32
  }
  func.func @transform_8(%arg0: i32) -> (i32, i32) {
    %c0_i32 = arith.constant 0 : i32
    %c0_i32_0 = arith.constant 0 : i32
    return %arg0, %c0_i32 : i32, i32
  }
}

</mosaic_0001>

<bundles_post_ra>
// kernel: tpu_custom_call.1
= control target key start
LH: loop header
LB: loop body
LE: loop exit
PB: predicated region body
PF: predicated region fallthrough
CT: control target
= control target key end

     0   :  { %13 = vsyncpa [#allocation3], 0  ;;  %s864_s0 = inlined_call_operand.hbm [shape: bf16[8,32], index: 0, kind: input, shape index: {}]   ;;  %s865_s1 = inlined_call_operand.hbm [shape: bf16[8,128], index: 1, kind: input, shape index: {}]   ;;  %s866_s2 = inlined_call_operand.hbm [shape: bf16[32,128], index: 2, kind: input, shape index: {}]   ;;  %s867_s3 = inlined_call_operand.vmem [shape: f32[1,128], index: 3, kind: input, shape index: {}]   ;;  %s868_s4 = inlined_call_operand.hbm [shape: bf16[128,128], index: 4, kind: input, shape index: {}]   ;;  %s869_s5 = inlined_call_operand.vmem [shape: f32[1,128], index: 5, kind: input, shape index: {}]   ;;  %s870_s6 = inlined_call_operand.hbm [shape: bf16[128,128], index: 6, kind: input, shape index: {}]   ;;  %s871_s7 = inlined_call_operand.vmem [shape: f32[1,128], index: 7, kind: input, shape index: {}]   ;;  %s872_s8 = inlined_call_operand.hbm [shape: bf16[8,128], index: 8, kind: output, shape index: {}]  }
   0x1   :  { %14 = vsyncpa [#allocation6], 0 }
   0x2   :  { %15 = vsyncpa [#allocation9], 0 }
   0x3   :  { %16 = vsyncpa [#allocation4], 0  ;;  %s694_s27 = smov [#allocation5]   ;;  %s554_s9 = scalar_lea.hbm %s865_s1, 64 }
   0x4   :  { %s33_s28 = sshll.u32 %s694_s27, 4  ;;  %p555_p0 = scmp.ne.s32.totalorder %s865_s1, %s554_s9  ;;  %s34_s28 = int_to_ptr.vmem [resolvable:$true] %s33_s28 }
   0x5   :  { %p558_p1 = scmp.lt.u32.totalorder %s554_s9, %s865_s1 }
   0x7   :  { %p560_p2 = pnand %p558_p1, %p555_p0 }
   0x9   :  { %563 = shalt.err (!%p560_p2)
}
   0xa   :  { %s564_s14 = scalar_lea.vmem %s34_s28, 64  ;;  %p569_p4 = scmp.lt.s32.totalorder %s34_s28, %s34_s28 }
   0xb   :  { %p565_p3 = scmp.ne.s32.totalorder %s34_s28, %s564_s14  ;;  %p570_p5 = scmp.lt.s32.totalorder %s564_s14, %s564_s14 }
   0xd   :  { %p571_p6 = por %p570_p5, %p569_p4 }
   0xf   :  { %p572_p7 = pnand %p571_p6, %p565_p3 }
  0x11   :  { %575 = shalt.err (!%p572_p7)
}
  0x12   :  { %36 = dma.hbm_to_vmem [thread:$0]  %s865_s1, 64, %s34_s28, [#allocation6]  }
  0x13   :  { %s695_s17 = smov [#allocation8]   ;;  %s696_s19 = smov [#allocation2]  }
  0x14   :  { %s56_s18 = sshll.u32 %s695_s17, 4  ;;  %s23_s20 = sshll.u32 %s696_s19, 4  ;;  %s57_s18 = int_to_ptr.vmem [resolvable:$true] %s56_s18  ;;  %s24_s20 = int_to_ptr.vmem [resolvable:$true] %s23_s20 }
  0x15   :  { %s576_s23 = scalar_lea.hbm %s868_s4, 1024 }
  0x16   :  { %p577_p8 = scmp.ne.s32.totalorder %s868_s4, %s576_s23  ;;  %p580_p9 = scmp.lt.u32.totalorder %s576_s23, %s868_s4 }
  0x18   :  { %p582_p10 = pnand %p580_p9, %p577_p8 }
  0x1a   :  { %585 = shalt.err (!%p582_p10)
}
  0x1b   :  { %s586_s1 = scalar_lea.vmem %s57_s18, 1024  ;;  %p591_p12 = scmp.lt.s32.totalorder %s57_s18, %s57_s18 }
  0x1c   :  { %p587_p11 = scmp.ne.s32.totalorder %s57_s18, %s586_s1  ;;  %p592_p13 = scmp.lt.s32.totalorder %s586_s1, %s586_s1 }
  0x1e   :  { %p593_p0 = por %p592_p13, %p591_p12 }
  0x20   :  { %p594_p1 = pnand %p593_p0, %p587_p11 }
  0x22   :  { %597 = shalt.err (!%p594_p1)
}
  0x23   :  { %s697_s28 = smov 64   ;;  %s698_s29 = smov 4  }
  0x24   :  { %62 = dma.hbm_to_vmem [thread:$0]  %s868_s4, 1024, %s57_s18, [#allocation9], %s697_s28, %s697_s28, %s698_s29  }
  0x25   :  { %s598_s12 = scalar_lea.hbm %s864_s0, 64 }
  0x26   :  { %p599_p2 = scmp.ne.s32.totalorder %s864_s0, %s598_s12  ;;  %p602_p3 = scmp.lt.u32.totalorder %s598_s12, %s864_s0 }
  0x28   :  { %p604_p4 = pnand %p602_p3, %p599_p2 }
  0x2a   :  { %607 = shalt.err (!%p604_p4)
}
  0x2b   :  { %s608_s17 = scalar_lea.vmem %s24_s20, 64  ;;  %p613_p6 = scmp.lt.s32.totalorder %s24_s20, %s24_s20 }
  0x2c   :  { %p609_p5 = scmp.ne.s32.totalorder %s24_s20, %s608_s17  ;;  %p614_p7 = scmp.lt.s32.totalorder %s608_s17, %s608_s17 }
  0x2e   :  { %p615_p8 = por %p614_p7, %p613_p6 }
  0x30   :  { %p616_p9 = pnand %p615_p8, %p609_p5 }
  0x32   :  { %619 = shalt.err (!%p616_p9)
}
  0x33   :  { %26 = dma.hbm_to_vmem [thread:$0]  %s864_s0, 64, %s24_s20, [#allocation3]  }
  0x34   :  { %s699_s19 = smov [#allocation7]   ;;  %s700_s22 = smov [#allocation10]  }
  0x35   :  { %s42_s21 = sshll.u32 %s699_s19, 4  ;;  %s70_s23 = sshll.u32 %s700_s22, 4  ;;  %s43_s21 = int_to_ptr.vmem [resolvable:$true] %s42_s21  ;;  %s71_s23 = int_to_ptr.vmem [resolvable:$true] %s70_s23 }
  0x36   :  { %s620_s26 = scalar_lea.hbm %s866_s2, 256 }
  0x37   :  { %p621_p10 = scmp.ne.s32.totalorder %s866_s2, %s620_s26  ;;  %p624_p11 = scmp.lt.u32.totalorder %s620_s26, %s866_s2 }
  0x39   :  { %p626_p12 = pnand %p624_p11, %p621_p10 }
  0x3b   :  { %629 = shalt.err (!%p626_p12)
}
  0x3c   :  { %s630_s0 = scalar_lea.vmem %s43_s21, 256  ;;  %p635_p0 = scmp.lt.s32.totalorder %s43_s21, %s43_s21 }
  0x3d   :  { %p631_p13 = scmp.ne.s32.totalorder %s43_s21, %s630_s0  ;;  %p636_p1 = scmp.lt.s32.totalorder %s630_s0, %s630_s0 }
  0x3f   :  { %p637_p2 = por %p636_p1, %p635_p0 }
  0x41   :  { %p638_p3 = pnand %p637_p2, %p631_p13 }
  0x43   :  { %641 = shalt.err (!%p638_p3)
}
  0x44   :  { %48 = dma.hbm_to_vmem [thread:$0]  %s866_s2, 256, %s43_s21, [#allocation6], %s697_s28, %s697_s28, %s698_s29  }
  0x45   :  { %s642_s13 = scalar_lea.hbm %s870_s6, 1024 }
  0x46   :  { %p643_p4 = scmp.ne.s32.totalorder %s870_s6, %s642_s13  ;;  %p646_p5 = scmp.lt.u32.totalorder %s642_s13, %s870_s6 }
  0x48   :  { %p648_p6 = pnand %p646_p5, %p643_p4 }
  0x4a   :  { %651 = shalt.err (!%p648_p6)
}
  0x4b   :  { %s652_s4 = scalar_lea.vmem %s71_s23, 1024  ;;  %p657_p8 = scmp.lt.s32.totalorder %s71_s23, %s71_s23 }
  0x4c   :  { %p653_p7 = scmp.ne.s32.totalorder %s71_s23, %s652_s4  ;;  %p658_p9 = scmp.lt.s32.totalorder %s652_s4, %s652_s4 }
  0x4e   :  { %p659_p10 = por %p658_p9, %p657_p8 }
  0x50   :  { %p660_p11 = pnand %p659_p10, %p653_p7 }
  0x52   :  { %663 = shalt.err (!%p660_p11)
}
  0x53   :  { %76 = dma.hbm_to_vmem [thread:$0]  %s870_s6, 1024, %s71_s23, [#allocation9], %s697_s28, %s697_s28, %s698_s29  }
  0x54   :  { %686 = dma.done.wait [#allocation3], 64  }
  0x55   :  { %687 = vsyncadd [#allocation3], 4294967232 }
  0x56   :  { %688 = dma.done.wait [#allocation6], 320  }
  0x57   :  { %689 = vsyncadd [#allocation6], 4294966976 }
  0x58   :  { %690 = dma.done.wait [#allocation9], 2048  }
  0x59   :  { %691 = vsyncadd [#allocation9], 4294965248  ;;  %v701_v0 = vmov 0.0   ;;  %vm702_vm0 = vmmov 0   ;;  %v536_v1 = vld [vmem:[#allocation7] sm:$0xff]   ;;  %v537_v2 = vld [vmem:[#allocation7 + $0x8] sm:$0xff]   ;;  %v392_v36 = vlaneseq }
  0x5a   :  { %478 = vmatprep.subr.bf16.mxu0 %v701_v0  ;;  %482 = vmatprep.mubr.msk.bf16.mxu0 %vm702_vm0, %v701_v0  ;;  %v538_v3 = vld [vmem:[#allocation8] sm:$0xff]   ;;  %vm119_vm1 = vcmask 261120   ;;  %v539_v4 = vld [vmem:[#allocation8 + $0x8] sm:$0xff]   ;;  %v540_v6 = vld [vmem:[#allocation8 + $0x10] sm:$0xff]  }
  0x5b   :  { %486 = vmatprep.subr.bf16.mxu1 %v701_v0  ;;  %502 = vmatprep.mubr.msk.bf16.mxu1 %vm702_vm0, %v701_v0  ;;  %v95_v5 = vld [vmem:[#allocation2] sm:$0xf]  ;;  %v541_v7 = vld [vmem:[#allocation8 + $0x18] sm:$0xff]   ;;  %v542_v8 = vld [vmem:[#allocation8 + $0x20] sm:$0xff]   ;;  %v393_v39 = vand.u32 127, %v392_v36 }
  0x5c   :  { %479 = vmatpush3.bf16.msra.mxu0 %v536_v1  ;;  %487 = vmatpush3.bf16.msra.mxu1 %v538_v3  ;;  %v543_v9 = vld [vmem:[#allocation8 + $0x28] sm:$0xff]   ;;  %v544_v10 = vld [vmem:[#allocation8 + $0x30] sm:$0xff]   ;;  %v545_v11 = vld [vmem:[#allocation8 + $0x38] sm:$0xff]  }
  0x5d   :  { %480 = vmatprep.subr.bf16.mxu0 %v701_v0  ;;  %488 = vmatprep.subr.bf16.mxu1 %v701_v0  ;;  %v546_v12 = vld [vmem:[#allocation10] sm:$0xff]   ;;  %v547_v13 = vld [vmem:[#allocation10 + $0x8] sm:$0xff]   ;;  %v548_v14 = vld [vmem:[#allocation10 + $0x10] sm:$0xff]   ;;  %vm394_vm2 = vcmp.lt.s32.totalorder %v393_v39, 16 }
  0x5e   :  { %v549_v15 = vld [vmem:[#allocation10 + $0x18] sm:$0xff]   ;;  %v550_v16 = vld [vmem:[#allocation10 + $0x20] sm:$0xff]   ;;  %v551_v17 = vld [vmem:[#allocation10 + $0x28] sm:$0xff]  }
  0x5f   :  { %v435_v18 = vld [vmem:[%s867_s3] ss:$0 sm:$0xff]  ;;  %v552_v26 = vld [vmem:[#allocation10 + $0x30] sm:$0xff]   ;;  %v553_v27 = vld [vmem:[#allocation10 + $0x38] sm:$0xff]  }
  0x60   :  { %481 = vmatpush3.bf16.msra.mxu0 %v537_v2  ;;  %489 = vmatpush3.bf16.msra.mxu1 %v539_v4  ;;  %v439_v28 = vld [vmem:[%s869_s5] ss:$0 sm:$0xff]  ;;  %v389_v37 = vld [vmem:[#allocation5] sm:$0xf]  ;;  %s703_s5 = smov [#allocation11]  }
  0x61   :  { %506 = vmatprep.subr.bf16.mxu0 %v701_v0  ;;  %490 = vmatprep.subr.bf16.mxu1 %v701_v0  ;;  %v448_v38 = vld [vmem:[%s871_s7] ss:$0 sm:$0xff]  ;;  %v390_v40 = vunpack.c.l.bf16 %v389_v37  ;;  %s424_s7 = sshll.u32 %s703_s5, 4  ;;  %s425_s7 = int_to_ptr.vmem [resolvable:$true] %s424_s7 }
  0x62   :  { %s664_s22 = scalar_lea.vmem %s425_s7, 64  ;;  %p669_p13 = scmp.lt.s32.totalorder %s425_s7, %s425_s7 }
  0x63   :  { %483 = vmatmul.mubr.msk.bf16.vlgmr.msra.gmra.mrb[0].mxu0 %vm119_vm1, %v95_v5  ;;  %p665_p12 = scmp.ne.s32.totalorder %s425_s7, %s664_s22  ;;  %p670_p0 = scmp.lt.s32.totalorder %s664_s22, %s664_s22 }
  0x64   :  { %522 = vmatprep.mubr.msk.bf16.mxu0 %vm702_vm0, %v701_v0  ;;  %491 = vmatpush3.bf16.msra.mxu1 %v540_v6 }
  0x65   :  { %492 = vmatprep.subr.bf16.mxu1 %v701_v0  ;;  %507 = vmatpush3.bf16.msra.mxu0 %v546_v12  ;;  %p671_p1 = por %p670_p0, %p669_p13 }
  0x66   :  { %508 = vmatprep.subr.bf16.mxu0 %v701_v0 }
  0x67   :  { %p672_p2 = pnand %p671_p1, %p665_p12 }
  0x68   :  { %493 = vmatpush3.bf16.msra.mxu1 %v541_v7 }
  0x69   :  { %494 = vmatprep.subr.bf16.mxu1 %v701_v0  ;;  %509 = vmatpush3.bf16.msra.mxu0 %v547_v13 }
  0x6a   :  { %510 = vmatprep.subr.bf16.mxu0 %v701_v0 }
  0x6c   :  { %495 = vmatpush3.bf16.msra.mxu1 %v542_v8 }
  0x6d   :  { %496 = vmatprep.subr.bf16.mxu1 %v701_v0  ;;  %511 = vmatpush3.bf16.msra.mxu0 %v548_v14 }
  0x6e   :  { %512 = vmatprep.subr.bf16.mxu0 %v701_v0 }
  0x70   :  { %497 = vmatpush3.bf16.msra.mxu1 %v543_v9 }
  0x71   :  { %498 = vmatprep.subr.bf16.mxu1 %v701_v0  ;;  %513 = vmatpush3.bf16.msra.mxu0 %v549_v15 }
  0x72   :  { %514 = vmatprep.subr.bf16.mxu0 %v701_v0 }
  0x74   :  { %499 = vmatpush3.bf16.msra.mxu1 %v544_v10 }
  0x75   :  { %500 = vmatprep.subr.bf16.mxu1 %v701_v0  ;;  %515 = vmatpush3.bf16.msra.mxu0 %v550_v16 }
  0x76   :  { %516 = vmatprep.subr.bf16.mxu0 %v701_v0 }
  0x78   :  { %501 = vmatpush3.bf16.msra.mxu1 %v545_v11 }
  0x79   :  { %517 = vmatpush3.bf16.msra.mxu0 %v551_v17 }
  0x7a   :  { %518 = vmatprep.subr.bf16.mxu0 %v701_v0 }
  0x7d   :  { %519 = vmatpush3.bf16.msra.mxu0 %v552_v26 }
  0x7e   :  { %520 = vmatprep.subr.bf16.mxu0 %v701_v0 }
  0x81   :  { %521 = vmatpush3.bf16.msra.mxu0 %v553_v27 }
 0x136   :  { %v157_v19 = vpop.f32.mrb[0].mxu0 }
 0x137   :  { %v158_v20 = vadd.f32 %v435_v18, %v157_v19  ;;  %v484_v21 = vpop.f32.mrb[1].mxu0 }
 0x138   :  { %v160_v22 = vpop.f32.mrb[2].mxu0 }
 0x139   :  { %v163_v23 = vmax.f32 %v158_v20, 0.0  ;;  %v485_v24 = vpop.f32.mrb[3].mxu0 }
 0x13b   :  { %v164_v25 = vpack.c.bf16 %v163_v23, %v163_v23 }
 0x13d   :  { %503 = vmatmul.mubr.bf16.vlgmr.msra.gmra.mrb[0].mxu1 %v164_v25 }
 0x210   :  { %v270_v29 = vpop.f32.mrb[0].mxu1 }
 0x211   :  { %v271_v30 = vadd.f32 %v439_v28, %v270_v29  ;;  %v504_v31 = vpop.f32.mrb[1].mxu1 }
 0x212   :  { %v273_v32 = vpop.f32.mrb[2].mxu1 }
 0x213   :  { %v276_v33 = vmax.f32 %v271_v30, 0.0  ;;  %v505_v34 = vpop.f32.mrb[3].mxu1 }
 0x215   :  { %v277_v35 = vpack.c.bf16 %v276_v33, %v276_v33 }
 0x217   :  { %523 = vmatmul.mubr.bf16.vlgmr.msra.gmra.mrb[4].mxu0 %v277_v35 }
 0x2ea   :  { %v383_v41 = vpop.f32.mrb[4].mxu0 }
 0x2eb   :  { %v384_v42 = vadd.f32 %v448_v38, %v383_v41  ;;  %v524_v43 = vpop.f32.mrb[5].mxu0 }
 0x2ec   :  { %v386_v44 = vpop.f32.mrb[6].mxu0 }
 0x2ed   :  { %v525_v45 = vpop.f32.mrb[7].mxu0  ;;  %v391_v46 = vadd.f32 %v390_v40, %v384_v42 }
 0x2ef   :  { %v395_v47 = vsel %vm394_vm2, %v391_v46, -inf }
 0x2f0   :  { %396 = vmax.xlane.f32.xlu0 %v395_v47 }
 0x37d   :  { %v397_v48 = vpop.xlane.xlu0 %396 }
 0x37e   :  { %vm398_vm3 = vcmp.eq.f32.partialorder %v395_v47, %v397_v48 }
 0x37f   :  { %v399_v49 = vsel %vm398_vm3, %v393_v39, 2147483647 }
 0x380   :  { %v401_v50 = vshra.s32 %v399_v49, 16  ;;  %v400_v52 = vand.u32 65535, %v399_v49 }
 0x382   :  { %v403_v51 = vcvt.s32.f32 %v401_v50  ;;  %v402_v54 = vcvt.s32.f32 %v400_v52 }
 0x384   :  { %404 = vmin.xlane.f32.xlu0 %v403_v51 }
 0x411   :  { %v405_v53 = vpop.xlane.xlu0 %404 }
 0x412   :  { %vm406_vm4 = vcmp.eq.f32.partialorder %v403_v51, %v405_v53  ;;  %v411_v56 = vcvt.f32.s32 %v405_v53 }
 0x413   :  { %v407_v55 = vsel %vm406_vm4, %v402_v54, inf }
 0x414   :  { %408 = vmin.xlane.f32.xlu1 %v407_v55  ;;  %v412_v58 = vshll.u32 %v411_v56, 16 }
 0x4a1   :  { %v409_v57 = vpop.xlane.xlu1 %408 }
 0x4a2   :  { %v410_v59 = vcvt.f32.s32 %v409_v57 }
 0x4a4   :  { %v413_v60 = vadd.s32 %v412_v58, %v410_v59 }
 0x4a6   :  { %vm414_vm5 = vcmp.eq.s32.totalorder %v393_v39, %v413_v60 }
 0x4a7   :  { %v415_v61 = vsel %vm414_vm5, 1.0, %v701_v0 }
 0x4a8   :  { %v416_v62 = vpack.c.bf16 %v415_v61, %v415_v61 }
 0x4aa   :  { %417 = vst [vmem:[#allocation11] sm:$0xf] %v416_v62 }
 0x4ab   :  { %675 = shalt.err (!%p672_p2)
}
 0x4ac   :  { %s676_s25 = scalar_lea.hbm %s872_s8, 64 }
 0x4ad   :  { %p677_p3 = scmp.ne.s32.totalorder %s872_s8, %s676_s25  ;;  %p680_p4 = scmp.lt.u32.totalorder %s676_s25, %s872_s8 }
 0x4af   :  { %p682_p5 = pnand %p680_p4, %p677_p3 }
 0x4b1   :  { %685 = shalt.err (!%p682_p5)
}
 0x4b2   :  { %427 = dma.vmem_to_hbm [thread:$0]  %s425_s7, 64, %s872_s8, [#allocation4]  }
 0x4b3   :  { %692 = dma.done.wait [#allocation4], 64  }
 0x4b4   :  { %693 = vsyncadd [#allocation4], 4294967232 }
 0x4b5   :  { %431 = vsyncpa [#allocation3], 1 }
 0x4b6   :  { %432 = vsyncpa [#allocation6], 1 }
 0x4b7   :  { %433 = vsyncpa [#allocation9], 1 }
 0x4b8   :  { %434 = vsyncpa [#allocation4], 1 }

</bundles_post_ra>
